<compile_context>
chip_gen: v7x
topology: tpu7x:2x2x1
jax: 0.10.0
libtpu: 0.0.40
codegen_flags: <defaults>
</compile_context>

<pallas_src>
import functools

import jax
import jax.numpy as jnp
from jax.experimental import pallas as pl
from jax.experimental.pallas import tpu as pltpu


def _conv_in_lrelu_kernel(x_ref, w_ref, o_ref, *,
                          spb, wp, n_ext, w_out, hw_valid,
                          kh, kw, stride, dila, eps, neg_slope):
    # x_ref: (spb, Cin_pad, L)          flattened padded image(s)
    # w_ref: (Cout, KH*KW*Cin_pad)      pre-reshaped weights, (i, j, c) order
    # o_ref: (spb, Cout, n_ext)         extended (lane-dense) output block
    w = w_ref[...]

    # Validity mask over extended columns, built in-kernel (no extra DMA).
    cols = jax.lax.broadcasted_iota(jnp.int32, (1, n_ext), 1)
    m = ((cols % wp) < w_out).astype(jnp.float32)          # (1, n_ext)
    inv_n = 1.0 / hw_valid

    for s in range(spb):                                    # unrolled (spb static)
        x = x_ref[s]                                        # (Cin_pad, L)

        # im2col: every tap is one contiguous (strided) lane slice.
        taps = []
        for i in range(kh):
            for j in range(kw):
                off = i * dila * wp + j * dila
                limit = off + stride * (n_ext - 1) + 1
                taps.append(x[:, off:limit:stride])          # (Cin_pad, n_ext)
        p = jnp.concatenate(taps, axis=0)                    # (KH*KW*Cin_pad, n_ext)

        # Single MXU matmul, f32 accumulation (conv bias cancelled by IN).
        acc = jnp.dot(w, p, preferred_element_type=jnp.float32)   # (Cout, n_ext)

        # InstanceNorm2d (affine=False, biased variance) over valid columns.
        # Independent reductions: mean and E[x^2] both depend only on acc.
        am = acc * m
        mean = jnp.sum(am, axis=1, keepdims=True) * inv_n          # (Cout, 1)
        ex2 = jnp.sum(am * acc, axis=1, keepdims=True) * inv_n     # (Cout, 1)
        var = ex2 - mean * mean
        y = (acc - mean) * jax.lax.rsqrt(var + eps)

        # LeakyReLU(0.3) as max(y, 0.3*y).
        y = jnp.maximum(y, neg_slope * y)
        o_ref[s] = y.astype(o_ref.dtype)


def _has_dual_tensorcore():
    """Heuristic: v7x has 2 TensorCores per chip; v5e/v6e have 1."""
    try:
        return "v7" in jax.devices()[0].device_kind.lower()
    except Exception:  # pragma: no cover - defensive, default to folded batch
        return False


def conv_block1_pallas(x_nchw, weight_oihw, bias_co=None, *,
                       stride=1, pad=1, dila=1, eps=1e-5, neg_slope=0.3,
                       batch_parallel=None):
    """x_nchw: (N, Cin, H, W); weight_oihw: (Cout, Cin, KH, KW) (PyTorch layout).

    Returns (N, Cout, Ho, Wo).  The conv bias is accepted for API parity but is
    mathematically cancelled by the affine-free InstanceNorm, so it is unused.
    """
    del bias_co  # exactly cancelled by InstanceNorm's mean subtraction
    n, c_in, h, w = x_nchw.shape
    c_out, c_in_w, kh, kw = weight_oihw.shape
    assert c_in_w == c_in

    hp, wp = h + 2 * pad, w + 2 * pad
    h_out = (hp - dila * (kh - 1) - 1) // stride + 1
    w_out = (wp - dila * (kw - 1) - 1) // stride + 1
    n_ext = h_out * wp                       # extended (padded-width) columns

    # Pad Cin up to a multiple of 8 so each im2col tap is a full sublane tile.
    c_in_pad = -(-c_in // 8) * 8

    # Layout plumbing only (stays NCHW): pad channels+spatial, flatten H*W, and
    # add a small tail so the last tap's slice stays in bounds.
    x_pad = jnp.pad(x_nchw, ((0, 0), (0, c_in_pad - c_in), (pad, pad), (pad, pad)))
    x_flat = x_pad.reshape(n, c_in_pad, hp * wp)
    off_max = (kh - 1) * dila * wp + (kw - 1) * dila
    tail = max(0, off_max + stride * (n_ext - 1) + 1 - hp * wp)
    if tail:
        x_flat = jnp.pad(x_flat, ((0, 0), (0, 0), (0, tail)))
    l_flat = hp * wp + tail

    # Weights -> (Cout, KH*KW*Cin_pad), matching the (i, j, c) row order of P;
    # padded channel columns are zero so they contribute nothing.
    w4 = jnp.transpose(weight_oihw, (0, 2, 3, 1))            # (O, KH, KW, Cin)
    w4 = jnp.pad(w4, ((0, 0), (0, 0), (0, 0), (0, c_in_pad - c_in)))
    w2d = w4.reshape(c_out, kh * kw * c_in_pad)

    # Batch handling: fold the whole batch into one grid step on single-TC
    # chips; keep a batch-parallel grid on dual-TC v7x when N >= 2.
    if batch_parallel is None:
        batch_parallel = _has_dual_tensorcore()
    spb = 1 if (batch_parallel and n > 1) else n             # samples per step
    grid = (n // spb,)

    kernel = functools.partial(
        _conv_in_lrelu_kernel,
        spb=spb, wp=wp, n_ext=n_ext, w_out=w_out, hw_valid=h_out * w_out,
        kh=kh, kw=kw, stride=stride, dila=dila, eps=eps, neg_slope=neg_slope)

    out_ext = pl.pallas_call(
        kernel,
        out_shape=jax.ShapeDtypeStruct((n, c_out, n_ext), x_nchw.dtype),
        grid_spec=pltpu.PrefetchScalarGridSpec(
            num_scalar_prefetch=0,
            grid=grid,
            in_specs=[
                pl.BlockSpec((spb, c_in_pad, l_flat), lambda b: (b, 0, 0)),
                pl.BlockSpec((c_out, kh * kw * c_in_pad), lambda b: (0, 0)),
            ],
            out_specs=pl.BlockSpec((spb, c_out, n_ext), lambda b: (b, 0, 0)),
        ),
        compiler_params=pltpu.CompilerParams(
            dimension_semantics=("parallel",)),
    )(x_flat, w2d)

    # Drop the garbage extended columns; pure layout plumbing, already NCHW.
    return out_ext.reshape(n, c_out, h_out, wp)[:, :, :, :w_out]


def _reference(x_nchw, w_oihw, b_co, stride, pad, dila,
               eps=1e-5, neg_slope=0.3):
    """Pure-JAX reference (lax.conv + bias + InstanceNorm + LeakyReLU)."""
    y = jax.lax.conv_general_dilated(
        x_nchw.astype(jnp.float32), w_oihw.astype(jnp.float32),
        window_strides=(stride, stride),
        padding=((pad, pad), (pad, pad)),
        rhs_dilation=(dila, dila),
        dimension_numbers=("NCHW", "OIHW", "NCHW"))
    y = y + b_co.astype(jnp.float32)[None, :, None, None]
    mean = jnp.mean(y, axis=(2, 3), keepdims=True)
    var = jnp.mean((y - mean) ** 2, axis=(2, 3), keepdims=True)
    y = (y - mean) * jax.lax.rsqrt(var + eps)
    return jnp.where(y >= 0, y, neg_slope * y)


if __name__ == "__main__":
    # Small shapes consistent with the module: batch=2, in_ch=4, out_ch=8,
    # spatial 16x16, stride=1, padding=1, dilation=1.
    N, C_IN, H, W = 2, 4, 16, 16
    C_OUT, KH, KW = 8, 3, 3
    STRIDE, PAD, DILA = 1, 1, 1

    key = jax.random.PRNGKey(0)
    kx, kw_, kb = jax.random.split(key, 3)

    x = jax.random.normal(kx, (N, C_IN, H, W), dtype=jnp.float32)
    fan_in = C_IN * KH * KW
    weight = jax.random.normal(kw_, (C_OUT, C_IN, KH, KW),
                               dtype=jnp.float32) / jnp.sqrt(fan_in)
    bias = jax.random.normal(kb, (C_OUT,), dtype=jnp.float32) * 0.1

    out = conv_block1_pallas(x, weight, bias,
                             stride=STRIDE, pad=PAD, dila=DILA)
    out = jax.block_until_ready(out)

    ref = _reference(x, weight, bias, STRIDE, PAD, DILA)
    assert out.shape == (N, C_OUT, H, W)
    err = float(jnp.max(jnp.abs(out - ref)))
    assert jnp.allclose(out, ref, atol=1e-4, rtol=1e-4), err

    print("KERNEL_OK")
</pallas_src>

<mosaic_0001>
module attributes {stable_mosaic.version = 11 : i64} {
  func.func @_conv_in_lrelu_kernel(%arg0: i32, %arg1: memref<2x8x326xf32, #tpu.memory_space<vmem>>, %arg2: memref<8x72xf32, #tpu.memory_space<vmem>>, %arg3: memref<2x8x288xf32, #tpu.memory_space<vmem>>) attributes {dimension_semantics = [#tpu.dimension_semantics<parallel>], iteration_bounds = array<i64: 1>, scalar_prefetch = 0 : i64, scratch_operands = 0 : i64, tpu.core_type = #tpu.core_type<tc>, window_params = [{transform_indices = @transform_0, window_bounds = array<i64: 2, 8, 326>}, {pipeline_mode = #tpu.pipeline_mode<synchronous>, transform_indices = @transform_1, window_bounds = array<i64: 8, 72>}, {transform_indices = @transform_2, window_bounds = array<i64: 2, 8, 288>}]} {
    %c0 = arith.constant 0 : index
    %c0_0 = arith.constant 0 : index
    %0 = vector.load %arg2[%c0, %c0_0] : memref<8x72xf32, #tpu.memory_space<vmem>>, vector<8x72xf32>
    %1 = tpu.iota {dimensions = array<i32: 1>} : vector<1x288xi32>
    %c18_i32 = arith.constant 18 : i32
    %c0_i32 = arith.constant 0 : i32
    %2 = arith.cmpi eq, %c18_i32, %c0_i32 : i32
    %c1_i32 = arith.constant 1 : i32
    %3 = arith.select %2, %c1_i32, %c18_i32 : i32
    %4 = vector.broadcast %3 : i32 to vector<1x288xi32>
    %5 = arith.remsi %1, %4 : vector<1x288xi32>
    %c0_i32_1 = arith.constant 0 : i32
    %6 = vector.broadcast %c0_i32_1 : i32 to vector<1x288xi32>
    %7 = arith.cmpi ne, %5, %6 : vector<1x288xi32>
    %c0_i32_2 = arith.constant 0 : i32
    %8 = vector.broadcast %c0_i32_2 : i32 to vector<1x288xi32>
    %9 = arith.cmpi slt, %5, %8 : vector<1x288xi32>
    %c0_i32_3 = arith.constant 0 : i32
    %10 = arith.cmpi slt, %3, %c0_i32_3 : i32
    %11 = vector.broadcast %10 : i1 to vector<1x288xi1>
    %12 = vector.broadcast %11 : vector<1x288xi1> to vector<1x288xi1>
    %13 = arith.xori %9, %12 : vector<1x288xi1>
    %14 = arith.andi %13, %7 : vector<1x288xi1>
    %15 = vector.broadcast %3 : i32 to vector<1x288xi32>
    %16 = arith.addi %5, %15 : vector<1x288xi32>
    %17 = arith.select %14, %16, %5 : vector<1x288xi1>, vector<1x288xi32>
    %c16_i32 = arith.constant 16 : i32
    %18 = vector.broadcast %c16_i32 : i32 to vector<1x288xi32>
    %19 = arith.cmpi slt, %17, %18 : vector<1x288xi32>
    %20 = arith.extui %19 : vector<1x288xi1> to vector<1x288xi32>
    %21 = arith.sitofp %20 : vector<1x288xi32> to vector<1x288xf32>
    %c0_4 = arith.constant 0 : index
    %c0_5 = arith.constant 0 : index
    %c0_6 = arith.constant 0 : index
    %22 = vector.load %arg1[%c0_4, %c0_5, %c0_6] : memref<2x8x326xf32, #tpu.memory_space<vmem>>, vector<1x8x326xf32>
    %23 = vector.shape_cast %22 : vector<1x8x326xf32> to vector<8x326xf32>
    %24 = vector.extract_strided_slice %23 {offsets = [0, 0], sizes = [8, 288], strides = [1, 1]} : vector<8x326xf32> to vector<8x288xf32>
    %25 = vector.extract_strided_slice %23 {offsets = [0, 1], sizes = [8, 288], strides = [1, 1]} : vector<8x326xf32> to vector<8x288xf32>
    %26 = vector.extract_strided_slice %23 {offsets = [0, 2], sizes = [8, 288], strides = [1, 1]} : vector<8x326xf32> to vector<8x288xf32>
    %27 = vector.extract_strided_slice %23 {offsets = [0, 18], sizes = [8, 288], strides = [1, 1]} : vector<8x326xf32> to vector<8x288xf32>
    %28 = vector.extract_strided_slice %23 {offsets = [0, 19], sizes = [8, 288], strides = [1, 1]} : vector<8x326xf32> to vector<8x288xf32>
    %29 = vector.extract_strided_slice %23 {offsets = [0, 20], sizes = [8, 288], strides = [1, 1]} : vector<8x326xf32> to vector<8x288xf32>
    %30 = vector.extract_strided_slice %23 {offsets = [0, 36], sizes = [8, 288], strides = [1, 1]} : vector<8x326xf32> to vector<8x288xf32>
    %31 = vector.extract_strided_slice %23 {offsets = [0, 37], sizes = [8, 288], strides = [1, 1]} : vector<8x326xf32> to vector<8x288xf32>
    %32 = vector.extract_strided_slice %23 {offsets = [0, 38], sizes = [8, 288], strides = [1, 1]} : vector<8x326xf32> to vector<8x288xf32>
    %33 = tpu.concatenate %24, %25, %26, %27, %28, %29, %30, %31, %32 in 0 : vector<8x288xf32>, vector<8x288xf32>, vector<8x288xf32>, vector<8x288xf32>, vector<8x288xf32>, vector<8x288xf32>, vector<8x288xf32>, vector<8x288xf32>, vector<8x288xf32> -> vector<72x288xf32>
    %cst = arith.constant dense<0.000000e+00> : vector<8x288xf32>
    %34 = tpu.matmul %0, %33, %cst {dimension_numbers = #tpu.dot_dimension_numbers<[1], [0], [0], [1], [0, 0, 1, 1], [], []>} : vector<8x72xf32>, vector<72x288xf32>, vector<8x288xf32> -> vector<8x288xf32>
    %35 = vector.broadcast %21 : vector<1x288xf32> to vector<8x288xf32>
    %36 = arith.mulf %34, %35 : vector<8x288xf32>
    %cst_7 = arith.constant dense<0.000000e+00> : vector<8xf32>
    %37 = vector.multi_reduction <add>, %36, %cst_7 [1] : vector<8x288xf32> to vector<8xf32>
    %38 = vector.shape_cast %37 : vector<8xf32> to vector<8x1xf32>
    %cst_8 = arith.constant 3.906250e-03 : f32
    %39 = vector.broadcast %cst_8 : f32 to vector<8x1xf32>
    %40 = arith.mulf %38, %39 : vector<8x1xf32>
    %41 = arith.mulf %36, %34 : vector<8x288xf32>
    %cst_9 = arith.constant dense<0.000000e+00> : vector<8xf32>
    %42 = vector.multi_reduction <add>, %41, %cst_9 [1] : vector<8x288xf32> to vector<8xf32>
    %43 = vector.shape_cast %42 : vector<8xf32> to vector<8x1xf32>
    %cst_10 = arith.constant 3.906250e-03 : f32
    %44 = vector.broadcast %cst_10 : f32 to vector<8x1xf32>
    %45 = arith.mulf %43, %44 : vector<8x1xf32>
    %46 = arith.mulf %40, %40 : vector<8x1xf32>
    %47 = arith.subf %45, %46 : vector<8x1xf32>
    %48 = vector.broadcast %40 : vector<8x1xf32> to vector<8x288xf32>
    %49 = arith.subf %34, %48 : vector<8x288xf32>
    %cst_11 = arith.constant 9.99999974E-6 : f32
    %50 = vector.broadcast %cst_11 : f32 to vector<8x1xf32>
    %51 = arith.addf %47, %50 : vector<8x1xf32>
    %52 = math.rsqrt %51 : vector<8x1xf32>
    %53 = vector.broadcast %52 : vector<8x1xf32> to vector<8x288xf32>
    %54 = arith.mulf %49, %53 : vector<8x288xf32>
    %cst_12 = arith.constant 3.000000e-01 : f32
    %55 = vector.broadcast %cst_12 : f32 to vector<8x288xf32>
    %56 = arith.mulf %55, %54 : vector<8x288xf32>
    %57 = arith.maximumf %54, %56 : vector<8x288xf32>
    %c0_13 = arith.constant 0 : index
    %c0_14 = arith.constant 0 : index
    %c0_15 = arith.constant 0 : index
    %58 = vector.load %arg3[%c0_13, %c0_14, %c0_15] : memref<2x8x288xf32, #tpu.memory_space<vmem>>, vector<1x8x288xf32>
    %59 = vector.shape_cast %58 : vector<1x8x288xf32> to vector<8x288xf32>
    %60 = vector.shape_cast %57 : vector<8x288xf32> to vector<1x8x288xf32>
    tpu.vector_store %arg3[%c0_13, %c0_14, %c0_15], %60 {strides = array<i32>} : memref<2x8x288xf32, #tpu.memory_space<vmem>>, vector<1x8x288xf32>,
    %c1 = arith.constant 1 : index
    %c0_16 = arith.constant 0 : index
    %c0_17 = arith.constant 0 : index
    %61 = vector.load %arg1[%c1, %c0_16, %c0_17] : memref<2x8x326xf32, #tpu.memory_space<vmem>>, vector<1x8x326xf32>
    %62 = vector.shape_cast %61 : vector<1x8x326xf32> to vector<8x326xf32>
    %63 = vector.extract_strided_slice %62 {offsets = [0, 0], sizes = [8, 288], strides = [1, 1]} : vector<8x326xf32> to vector<8x288xf32>
    %64 = vector.extract_strided_slice %62 {offsets = [0, 1], sizes = [8, 288], strides = [1, 1]} : vector<8x326xf32> to vector<8x288xf32>
    %65 = vector.extract_strided_slice %62 {offsets = [0, 2], sizes = [8, 288], strides = [1, 1]} : vector<8x326xf32> to vector<8x288xf32>
    %66 = vector.extract_strided_slice %62 {offsets = [0, 18], sizes = [8, 288], strides = [1, 1]} : vector<8x326xf32> to vector<8x288xf32>
    %67 = vector.extract_strided_slice %62 {offsets = [0, 19], sizes = [8, 288], strides = [1, 1]} : vector<8x326xf32> to vector<8x288xf32>
    %68 = vector.extract_strided_slice %62 {offsets = [0, 20], sizes = [8, 288], strides = [1, 1]} : vector<8x326xf32> to vector<8x288xf32>
    %69 = vector.extract_strided_slice %62 {offsets = [0, 36], sizes = [8, 288], strides = [1, 1]} : vector<8x326xf32> to vector<8x288xf32>
    %70 = vector.extract_strided_slice %62 {offsets = [0, 37], sizes = [8, 288], strides = [1, 1]} : vector<8x326xf32> to vector<8x288xf32>
    %71 = vector.extract_strided_slice %62 {offsets = [0, 38], sizes = [8, 288], strides = [1, 1]} : vector<8x326xf32> to vector<8x288xf32>
    %72 = tpu.concatenate %63, %64, %65, %66, %67, %68, %69, %70, %71 in 0 : vector<8x288xf32>, vector<8x288xf32>, vector<8x288xf32>, vector<8x288xf32>, vector<8x288xf32>, vector<8x288xf32>, vector<8x288xf32>, vector<8x288xf32>, vector<8x288xf32> -> vector<72x288xf32>
    %cst_18 = arith.constant dense<0.000000e+00> : vector<8x288xf32>
    %73 = tpu.matmul %0, %72, %cst_18 {dimension_numbers = #tpu.dot_dimension_numbers<[1], [0], [0], [1], [0, 0, 1, 1], [], []>} : vector<8x72xf32>, vector<72x288xf32>, vector<8x288xf32> -> vector<8x288xf32>
    %74 = vector.broadcast %21 : vector<1x288xf32> to vector<8x288xf32>
    %75 = arith.mulf %73, %74 : vector<8x288xf32>
    %cst_19 = arith.constant dense<0.000000e+00> : vector<8xf32>
    %76 = vector.multi_reduction <add>, %75, %cst_19 [1] : vector<8x288xf32> to vector<8xf32>
    %77 = vector.shape_cast %76 : vector<8xf32> to vector<8x1xf32>
    %cst_20 = arith.constant 3.906250e-03 : f32
    %78 = vector.broadcast %cst_20 : f32 to vector<8x1xf32>
    %79 = arith.mulf %77, %78 : vector<8x1xf32>
    %80 = arith.mulf %75, %73 : vector<8x288xf32>
    %cst_21 = arith.constant dense<0.000000e+00> : vector<8xf32>
    %81 = vector.multi_reduction <add>, %80, %cst_21 [1] : vector<8x288xf32> to vector<8xf32>
    %82 = vector.shape_cast %81 : vector<8xf32> to vector<8x1xf32>
    %cst_22 = arith.constant 3.906250e-03 : f32
    %83 = vector.broadcast %cst_22 : f32 to vector<8x1xf32>
    %84 = arith.mulf %82, %83 : vector<8x1xf32>
    %85 = arith.mulf %79, %79 : vector<8x1xf32>
    %86 = arith.subf %84, %85 : vector<8x1xf32>
    %87 = vector.broadcast %79 : vector<8x1xf32> to vector<8x288xf32>
    %88 = arith.subf %73, %87 : vector<8x288xf32>
    %cst_23 = arith.constant 9.99999974E-6 : f32
    %89 = vector.broadcast %cst_23 : f32 to vector<8x1xf32>
    %90 = arith.addf %86, %89 : vector<8x1xf32>
    %91 = math.rsqrt %90 : vector<8x1xf32>
    %92 = vector.broadcast %91 : vector<8x1xf32> to vector<8x288xf32>
    %93 = arith.mulf %88, %92 : vector<8x288xf32>
    %cst_24 = arith.constant 3.000000e-01 : f32
    %94 = vector.broadcast %cst_24 : f32 to vector<8x288xf32>
    %95 = arith.mulf %94, %93 : vector<8x288xf32>
    %96 = arith.maximumf %93, %95 : vector<8x288xf32>
    %c1_25 = arith.constant 1 : index
    %c0_26 = arith.constant 0 : index
    %c0_27 = arith.constant 0 : index
    %97 = vector.load %arg3[%c1_25, %c0_26, %c0_27] : memref<2x8x288xf32, #tpu.memory_space<vmem>>, vector<1x8x288xf32>
    %98 = vector.shape_cast %97 : vector<1x8x288xf32> to vector<8x288xf32>
    %99 = vector.shape_cast %96 : vector<8x288xf32> to vector<1x8x288xf32>
    tpu.vector_store %arg3[%c1_25, %c0_26, %c0_27], %99 {strides = array<i32>} : memref<2x8x288xf32, #tpu.memory_space<vmem>>, vector<1x8x288xf32>,
    return
  }
  func.func @transform_0(%arg0: i32) -> (i32, i32, i32) {
    %c0_i32 = arith.constant 0 : i32
    %c0_i32_0 = arith.constant 0 : i32
    %c0_i32_1 = arith.constant 0 : i32
    return %arg0, %c0_i32, %c0_i32_0 : i32, i32, i32
  }
  func.func @transform_1(%arg0: i32) -> (i32, i32) {
    %c0_i32 = arith.constant 0 : i32
    %c0_i32_0 = arith.constant 0 : i32
    %c0_i32_1 = arith.constant 0 : i32
    return %c0_i32, %c0_i32_0 : i32, i32
  }
  func.func @transform_2(%arg0: i32) -> (i32, i32, i32) {
    %c0_i32 = arith.constant 0 : i32
    %c0_i32_0 = arith.constant 0 : i32
    %c0_i32_1 = arith.constant 0 : i32
    return %arg0, %c0_i32, %c0_i32_0 : i32, i32, i32
  }
}

</mosaic_0001>

<bundles_post_ra>
// kernel: tpu_custom_call.1
= control target key start
LH: loop header
LB: loop body
LE: loop exit
PB: predicated region body
PF: predicated region fallthrough
CT: control target
= control target key end

     0   :  { %7 = vsyncpa [#allocation3], 0  ;;  %s1201_s0 = inlined_call_operand.hbm [shape: f32[2,8,326], index: 0, kind: input, shape index: {}]   ;;  %s1202_s1 = inlined_call_operand.hbm [shape: f32[8,72], index: 1, kind: input, shape index: {}]   ;;  %s1203_s2 = inlined_call_operand.hbm [shape: f32[2,8,288], index: 2, kind: output, shape index: {}]  }
   0x1   :  { %8 = vsyncpa [#allocation6], 0 }
   0x2   :  { %9 = vsyncpa [#allocation4], 0  ;;  %s990_s9 = smov [#allocation2]   ;;  %s918_s13 = scalar_lea.hbm %s1201_s0, 768 }
   0x3   :  { %s15_s10 = sshll.u32 %s990_s9, 4  ;;  %p919_p0 = scmp.ne.s32.totalorder %s1201_s0, %s918_s13  ;;  %s16_s10 = int_to_ptr.vmem [resolvable:$true] %s15_s10 }
   0x4   :  { %p922_p1 = scmp.lt.u32.totalorder %s918_s13, %s1201_s0 }
   0x6   :  { %p924_p2 = pnand %p922_p1, %p919_p0 }
   0x8   :  { %927 = shalt.err (!%p924_p2)
}
   0x9   :  { %s928_s18 = scalar_lea.vmem %s16_s10, 768  ;;  %p933_p4 = scmp.lt.s32.totalorder %s16_s10, %s16_s10 }
   0xa   :  { %p929_p3 = scmp.ne.s32.totalorder %s16_s10, %s928_s18  ;;  %p934_p5 = scmp.lt.s32.totalorder %s928_s18, %s928_s18 }
   0xc   :  { %p935_p6 = por %p934_p5, %p933_p4 }
   0xe   :  { %p936_p7 = pnand %p935_p6, %p929_p3 }
  0x10   :  { %939 = shalt.err (!%p936_p7)
}
  0x11   :  { %s991_s19 = smov 384   ;;  %s992_s20 = smov 24  }
  0x12   :  { %21 = dma.hbm_to_vmem [thread:$0]  %s1201_s0, 768, %s16_s10, [#allocation3], %s991_s19, %s991_s19, %s992_s20  }
  0x13   :  { %s993_s23 = smov [#allocation5]   ;;  %s940_s27 = scalar_lea.hbm %s1202_s1, 128 }
  0x14   :  { %s28_s24 = sshll.u32 %s993_s23, 4  ;;  %p941_p8 = scmp.ne.s32.totalorder %s1202_s1, %s940_s27  ;;  %s29_s24 = int_to_ptr.vmem [resolvable:$true] %s28_s24 }
  0x15   :  { %p944_p9 = scmp.lt.u32.totalorder %s940_s27, %s1202_s1 }
  0x17   :  { %p946_p10 = pnand %p944_p9, %p941_p8 }
  0x19   :  { %949 = shalt.err (!%p946_p10)
}
  0x1a   :  { %s950_s4 = scalar_lea.vmem %s29_s24, 128  ;;  %p955_p12 = scmp.lt.s32.totalorder %s29_s24, %s29_s24 }
  0x1b   :  { %p951_p11 = scmp.ne.s32.totalorder %s29_s24, %s950_s4  ;;  %p956_p13 = scmp.lt.s32.totalorder %s950_s4, %s950_s4 }
  0x1d   :  { %p957_p0 = por %p956_p13, %p955_p12 }
  0x1f   :  { %p958_p1 = pnand %p957_p0, %p951_p11 }
  0x21   :  { %961 = shalt.err (!%p958_p1)
}
  0x22   :  { %31 = dma.hbm_to_vmem [thread:$0]  %s1202_s1, 128, %s29_s24, [#allocation6]  }
  0x23   :  { %984 = dma.done.wait [#allocation3], 768  }
  0x24   :  { %985 = vsyncadd [#allocation3], 4294966528 }
  0x25   :  { %986 = dma.done.wait [#allocation6], 128  }
  0x26   :  { %987 = vsyncadd [#allocation6], 4294967168  ;;  %v994_v0 = vmov 0.0|0.0   ;;  %v1049_v1 = vld [vmem:[#allocation2 + $0x8] sm:$0xff]  ;;  %v102_v2 = vld [vmem:[#allocation2 + $0x10] sm:$0xff]  ;;  %s995_s6 = smov 126  }
  0x27   :  { %762 = vmatprep.subr.bf16.mxu1 %v994_v0  ;;  %v1051_v3 = vld [vmem:[#allocation2] sm:$0xff]  ;;  %v834_v4 = vpack.i.bf16 %v102_v2, %v1049_v1  ;;  %s996_s1 = smov 127   ;;  %s997_s7 = smov 110   ;;  %v1000_v7 = vmov 0.0   ;;  %vm1003_vm0 = vmmov 0   ;;  %v1070_v8 = vld [vmem:[#allocation2 + $0x18] sm:$0xff] }
  0x28   :  { %v1054_v5 = vld [vmem:[#allocation2 + $0x20] sm:$0xff]  ;;  %s998_s8 = smov 108   ;;  %s999_s9 = smov 109   ;;  %270 = vmatprep.mubr.f32.mxu0 %v1000_v7  ;;  %722 = vmatprep.mubr.msk.f32.mxu1 %vm1003_vm0, %v1000_v7  ;;  %v1072_v9 = vld [vmem:[#allocation2 + $0x28] sm:$0xff]  ;;  %vm112_vm1 = vcmask 1039360   ;;  %vm124_vm2 = vcmask 1031168  }
  0x29   :  { %835 = vrot.lane.b32.xlu1 %v834_v4, %s995_s6  ;;  %825 = vrot.lane.b32.xlu0 %v834_v4, %s996_s1  ;;  %v829_v6 = vpack.i.bf16 %v1054_v5, %v1051_v3  ;;  %s1001_s10 = smov 91   ;;  %s1002_s11 = smov 92   ;;  %v879_v10 = vpack.i.bf16 %v1070_v8, %v1072_v9  ;;  %v899_v11 = vpack.i.bf16 %v1072_v9, %v1054_v5  ;;  %vm136_vm3 = vcmask 900096  }
  0x2a   :  { %s1004_s12 = smov 90   ;;  %vm160_vm4 = vcmask 883712   ;;  %vm148_vm5 = vcmask 891904   ;;  %vm184_vm6 = vcmask 744448   ;;  %vm172_vm7 = vcmask 752640   ;;  %s1005_s13 = smov [#allocation7]  }
  0x2b   :  { %vm196_vm8 = vcmask 736256   ;;  %vm202_vm9 = vcmask 588800   ;;  %s664_s14 = sshll.u32 %s1005_s13, 4  ;;  %s665_s14 = int_to_ptr.vmem [resolvable:$true] %s664_s14 }
  0x2c   :  { %s962_s15 = scalar_lea.vmem %s665_s14, 768  ;;  %p967_p3 = scmp.lt.s32.totalorder %s665_s14, %s665_s14 }
  0x2d   :  { %840 = vrot.lane.b32.xlu1 %v834_v4, %s997_s7  ;;  %830 = vrot.lane.b32.xlu0 %v829_v6, %s996_s1  ;;  %p963_p2 = scmp.ne.s32.totalorder %s665_s14, %s962_s15  ;;  %p968_p4 = scmp.lt.s32.totalorder %s962_s15, %s962_s15 }
  0x2f   :  { %p969_p5 = por %p968_p4, %p967_p3 }
  0x31   :  { %850 = vrot.lane.b32.xlu1 %v829_v6, %s997_s7  ;;  %845 = vrot.lane.b32.xlu0 %v829_v6, %s995_s6  ;;  %p970_p6 = pnand %p969_p5, %p963_p2 }
  0x35   :  { %860 = vrot.lane.b32.xlu1 %v834_v4, %s998_s8  ;;  %855 = vrot.lane.b32.xlu0 %v834_v4, %s999_s9 }
  0x39   :  { %154 = vrot.lane.b32.xlu1 %v1051_v3, %s998_s8  ;;  %865 = vrot.lane.b32.xlu0 %v829_v6, %s999_s9 }
  0x3d   :  { %875 = vrot.lane.b32.xlu1 %v834_v4, %s1001_s10  ;;  %870 = vrot.lane.b32.xlu0 %v834_v4, %s1002_s11 }
  0x41   :  { %178 = vrot.lane.b32.xlu1 %v1051_v3, %s1001_s10  ;;  %166 = vrot.lane.b32.xlu0 %v1051_v3, %s1002_s11 }
  0x45   :  { %194 = vrot.lane.b32.xlu1 %v102_v2, %s1004_s12  ;;  %192 = vrot.lane.b32.xlu0 %v1049_v1, %s1004_s12 }
  0x49   :  { %190 = vrot.lane.b32.xlu1 %v1051_v3, %s1004_s12  ;;  %880 = vrot.lane.b32.xlu0 %v879_v10, %s996_s1 }
  0x4d   :  { %890 = vrot.lane.b32.xlu1 %v879_v10, %s997_s7  ;;  %885 = vrot.lane.b32.xlu0 %v879_v10, %s995_s6 }
  0x51   :  { %900 = vrot.lane.b32.xlu1 %v899_v11, %s998_s8  ;;  %895 = vrot.lane.b32.xlu0 %v879_v10, %s999_s9 }
  0x55   :  { %905 = vrot.lane.b32.xlu1 %v899_v11, %s1002_s11  ;;  %436 = vrot.lane.b32.xlu0 %v1070_v8, %s998_s8 }
  0x59   :  { %447 = vrot.lane.b32.xlu1 %v1070_v8, %s1002_s11  ;;  %910 = vrot.lane.b32.xlu0 %v899_v11, %s1001_s10 }
  0x5d   :  { %471 = vrot.lane.b32.xlu1 %v1054_v5, %s1004_s12  ;;  %458 = vrot.lane.b32.xlu0 %v1070_v8, %s1001_s10 }
  0x61   :  { %469 = vrot.lane.b32.xlu1 %v1070_v8, %s1004_s12  ;;  %473 = vrot.lane.b32.xlu0 %v1072_v9, %s1004_s12 }
  0x9b   :  { %v836_v12 = vpop.permute.xlu1 %835  ;;  %v826_v13 = vpop.permute.xlu0 %825 }
  0x9c   :  { %v828_v14 = vunpack.i.h.bf16 %v826_v13  ;;  %v827_v15 = vunpack.i.l.bf16 %v826_v13  ;;  %v838_v16 = vunpack.i.h.bf16 %v836_v12  ;;  %v837_v17 = vunpack.i.l.bf16 %v836_v12 }
  0x9e   :  { %v763_v18 = vpack.c.bf16 %v828_v14, %v102_v2  ;;  %v114_v19 = vsel %vm112_vm1, %v827_v15, %v828_v14  ;;  %v126_v28 = vsel %vm124_vm2, %v837_v17, %v838_v16  ;;  %v1123_v14 = vld [vmem:[#allocation5] sm:$0xff] }
  0x9f   :  { %v841_v20 = vpop.permute.xlu1 %840  ;;  %v1091_v21 = vpop.permute.xlu0 %830  ;;  %v746_v22 = vpack.c.bf16 %v114_v19, %v1049_v1 }
  0xa0   :  { %v843_v23 = vunpack.i.h.bf16 %v841_v20  ;;  %v842_v24 = vunpack.i.l.bf16 %v841_v20  ;;  %v832_v25 = vunpack.i.l.bf16 %v1091_v21  ;;  %764 = vmatpush3.bf16.msra.mxu1 %v763_v18 }
  0xa1   :  { %747 = vmatprep.subr.bf16.mxu0 %v746_v22  ;;  %765 = vmatprep.subr.bf16.mxu1 %v994_v0 }
  0xa2   :  { %v766_v26 = vpack.c.bf16 %v843_v23, %v838_v16  ;;  %v113_v27 = vsel %vm112_vm1, %v832_v25, %v827_v15  ;;  %v138_v29 = vsel %vm136_vm3, %v842_v24, %v843_v23 }
  0xa3   :  { %v1099_v30 = vpop.permute.xlu1 %850  ;;  %v1101_v31 = vpop.permute.xlu0 %845  ;;  %v748_v32 = vpack.c.bf16 %v113_v27, %v1051_v3  ;;  %v750_v33 = vpack.c.bf16 %v138_v29, %v126_v28 }
  0xa4   :  { %v852_v34 = vunpack.i.l.bf16 %v1099_v30  ;;  %v847_v35 = vunpack.i.l.bf16 %v1101_v31  ;;  %767 = vmatpush3.bf16.msra.mxu1 %v766_v26  ;;  %v853_v25 = vunpack.i.h.bf16 %v1099_v30  ;;  %v848_v26 = vunpack.i.h.bf16 %v1101_v31 }
  0xa5   :  { %749 = vmatpush1.bf16.msra.mxu0 %v748_v32  ;;  %768 = vmatprep.subr.bf16.mxu1 %v994_v0 }
  0xa6   :  { %751 = vmatprep.subr.bf16.mxu0 %v750_v33  ;;  %v125_v36 = vsel %vm124_vm2, %v847_v35, %v837_v17  ;;  %v137_v37 = vsel %vm136_vm3, %v852_v34, %v842_v24  ;;  %v833_v17 = vunpack.i.h.bf16 %v1091_v21 }
  0xa7   :  { %v861_v38 = vpop.permute.xlu1 %860  ;;  %v856_v39 = vpop.permute.xlu0 %855  ;;  %v752_v40 = vpack.c.bf16 %v137_v37, %v125_v36 }
  0xa8   :  { %v863_v41 = vunpack.i.h.bf16 %v861_v38  ;;  %v862_v42 = vunpack.i.l.bf16 %v861_v38  ;;  %v858_v43 = vunpack.i.h.bf16 %v856_v39  ;;  %v857_v44 = vunpack.i.l.bf16 %v856_v39 }
  0xa9   :  { %753 = vmatpush1.bf16.msra.mxu0 %v752_v40 }
  0xaa   :  { %v769_v45 = vpack.c.bf16 %v863_v41, %v858_v43  ;;  %v150_v46 = vsel %vm148_vm5, %v857_v44, %v858_v43  ;;  %v162_v47 = vsel %vm160_vm4, %v862_v42, %v863_v41 }
  0xab   :  { %v155_v48 = vpop.permute.xlu1 %154  ;;  %v1111_v49 = vpop.permute.xlu0 %865  ;;  %v754_v50 = vpack.c.bf16 %v162_v47, %v150_v46 }
  0xac   :  { %v867_v51 = vunpack.i.l.bf16 %v1111_v49  ;;  %770 = vmatpush3.bf16.msra.mxu1 %v769_v45  ;;  %v161_v52 = vsel %vm160_vm4, %v155_v48, %v862_v42 }
  0xad   :  { %755 = vmatprep.subr.bf16.mxu0 %v754_v50  ;;  %771 = vmatprep.subr.bf16.mxu1 %v994_v0 }
  0xae   :  { %v149_v53 = vsel %vm148_vm5, %v867_v51, %v857_v44 }
  0xaf   :  { %v876_v54 = vpop.permute.xlu1 %875  ;;  %v871_v55 = vpop.permute.xlu0 %870  ;;  %v756_v56 = vpack.c.bf16 %v161_v52, %v149_v53 }
  0xb0   :  { %v878_v57 = vunpack.i.h.bf16 %v876_v54  ;;  %v877_v58 = vunpack.i.l.bf16 %v876_v54  ;;  %v873_v59 = vunpack.i.h.bf16 %v871_v55  ;;  %v872_v60 = vunpack.i.l.bf16 %v871_v55 }
  0xb1   :  { %757 = vmatpush1.bf16.msra.mxu0 %v756_v56 }
  0xb2   :  { %v772_v61 = vpack.c.bf16 %v878_v57, %v873_v59  ;;  %v174_v62 = vsel %vm172_vm7, %v872_v60, %v873_v59  ;;  %v186_v63 = vsel %vm184_vm6, %v877_v58, %v878_v57 }
  0xb3   :  { %v179_v1 = vpop.permute.xlu1 %178  ;;  %v167_v2 = vpop.permute.xlu0 %166  ;;  %v758_v3 = vpack.c.bf16 %v186_v63, %v174_v62 }
  0xb4   :  { %v185_v4 = vsel %vm184_vm6, %v179_v1, %v877_v58  ;;  %v173_v6 = vsel %vm172_vm7, %v167_v2, %v872_v60  ;;  %773 = vmatpush3.bf16.msra.mxu1 %v772_v61 }
  0xb5   :  { %v760_v10 = vpack.c.bf16 %v185_v4, %v173_v6  ;;  %759 = vmatprep.subr.bf16.mxu0 %v758_v3  ;;  %720 = vmatprep.subr.mxu1 %v1000_v7 }
  0xb7   :  { %v195_v11 = vpop.permute.xlu1 %194  ;;  %v193_v12 = vpop.permute.xlu0 %192  ;;  %761 = vmatpush1.bf16.msra.mxu0 %v760_v10 }
  0xb8   :  { %v198_v13 = vsel %vm196_vm8, %v193_v12, %v195_v11  ;;  %721 = vmatpush3.msra.mxu1 %v195_v11 }
  0xb9   :  { %222 = vmatprep.subr.mxu0 %v198_v13  ;;  %790 = vmatprep.subr.bf16.mxu1 %v994_v0  ;;  %v39_v13 = vlaneseq }
  0xba   :  { %723 = vmatmul.mubr.msk.f32.vlgmr.msra.gmra.mrb[0].mxu1 %vm202_vm9, %v1123_v14 }
  0xbb   :  { %v191_v15 = vpop.permute.xlu1 %190  ;;  %v881_v16 = vpop.permute.xlu0 %880  ;;  %743 = vmatprep.mubr.msk.f32.mxu1 %vm1003_vm0, %v1000_v7 }
  0xbc   :  { %v883_v18 = vunpack.i.h.bf16 %v881_v16  ;;  %v882_v19 = vunpack.i.l.bf16 %v881_v16  ;;  %v197_v20 = vsel %vm196_vm8, %v191_v15, %v193_v12  ;;  %v40_v15 = vand.u32 127, %v39_v13 }
  0xbd   :  { %223 = vmatpush1.msra.mxu0 %v197_v20 }
  0xbe   :  { %v398_v22 = vsel %vm112_vm1, %v883_v18, %v833_v17  ;;  %v791_v23 = vpack.c.bf16 %v882_v19, %v1072_v9  ;;  %680 = vmatmul.mubr.msk.f32.vlgmr.msra.gmra.mrb[0].mxu0 %vm202_vm9, %v1123_v14  ;;  %v399_v24 = vsel %vm112_vm1, %v833_v17, %v882_v19  ;;  %v42_v16 = vadd.s32 256, %v40_v15 }
  0xbf   :  { %v776_v21 = vpack.c.bf16 %v398_v22, %v1070_v8  ;;  %v891_v27 = vpop.permute.xlu1 %890  ;;  %v886_v28 = vpop.permute.xlu0 %885  ;;  %v774_v29 = vpack.c.bf16 %v399_v24, %v1054_v5  ;;  %544 = vmatprep.mubr.f32.mxu0 %v1000_v7  ;;  %v868_v5 = vunpack.i.h.bf16 %v1111_v49  ;;  %v41_v17 = vadd.s32 128, %v40_v15 }
  0xc0   :  { %v893_v32 = vunpack.i.h.bf16 %v891_v27  ;;  %v892_v33 = vunpack.i.l.bf16 %v891_v27  ;;  %v888_v9 = vunpack.i.h.bf16 %v886_v28  ;;  %v887_v34 = vunpack.i.l.bf16 %v886_v28  ;;  %792 = vmatpush3.bf16.msra.mxu1 %v791_v23 }
  0xc1   :  { %775 = vmatprep.subr.bf16.mxu0 %v774_v29  ;;  %793 = vmatprep.subr.bf16.mxu1 %v994_v0  ;;  %v1165_v18 = vmul.u32.u64.low 3817748708, %v42_v16  ;;  %v1166_v19 = vmul.u32.u64.high 3817748708, %v42_v16, %v1165_v18  ;;  %v1168_v20 = vmul.u32.u64.low 3817748708, %v40_v15  ;;  %v1169_v22 = vmul.u32.u64.high 3817748708, %v40_v15, %v1168_v20 }
  0xc2   :  { %v420_v30 = vsel %vm136_vm3, %v893_v32, %v853_v25  ;;  %v409_v31 = vsel %vm124_vm2, %v888_v9, %v848_v26  ;;  %v794_v35 = vpack.c.bf16 %v892_v33, %v887_v34  ;;  %777 = vmatpush1.bf16.msra.mxu0 %v776_v21  ;;  %v410_v8 = vsel %vm124_vm2, %v848_v26, %v887_v34 }
  0xc3   :  { %v780_v36 = vpack.c.bf16 %v420_v30, %v409_v31  ;;  %v901_v37 = vpop.permute.xlu1 %900  ;;  %v896_v38 = vpop.permute.xlu0 %895  ;;  %v421_v39 = vsel %vm136_vm3, %v853_v25, %v892_v33  ;;  %v1171_v23 = vmul.u32.u64.low 3817748708, %v41_v17  ;;  %v1172_v24 = vmul.u32.u64.high 3817748708, %v41_v17, %v1171_v23 }
  0xc4   :  { %v903_v40 = vunpack.i.h.bf16 %v901_v37  ;;  %v902_v41 = vunpack.i.l.bf16 %v901_v37  ;;  %v898_v42 = vunpack.i.h.bf16 %v896_v38  ;;  %v897_v43 = vunpack.i.l.bf16 %v896_v38  ;;  %795 = vmatpush3.bf16.msra.mxu1 %v794_v35 }
  0xc5   :  { %v778_v44 = vpack.c.bf16 %v421_v39, %v410_v8  ;;  %796 = vmatprep.subr.bf16.mxu1 %v994_v0  ;;  %v71_v25 = vshrl.u32 %v1166_v19, 4  ;;  %v49_v26 = vshrl.u32 %v1169_v22, 4  ;;  %v60_v21 = vshrl.u32 %v1172_v24, 4 }
  0xc6   :  { %v797_v45 = vpack.c.bf16 %v903_v40, %v897_v43  ;;  %v432_v46 = vsel %vm148_vm5, %v868_v5, %v897_v43  ;;  %v443_v47 = vsel %vm160_vm4, %v902_v41, %v903_v40  ;;  %v431_v51 = vsel %vm148_vm5, %v898_v42, %v868_v5 }
  0xc7   :  { %779 = vmatprep.subr.bf16.mxu0 %v778_v44  ;;  %v906_v48 = vpop.permute.xlu1 %905  ;;  %v437_v49 = vpop.permute.xlu0 %436  ;;  %v782_v50 = vpack.c.bf16 %v443_v47, %v432_v46  ;;  %v50_v27 = vmul.u32 18, %v49_v26  ;;  %v61_v28 = vmul.u32 18, %v60_v21 }
  0xc8   :  { %781 = vmatpush1.bf16.msra.mxu0 %v780_v36  ;;  %v442_v52 = vsel %vm160_vm4, %v437_v49, %v902_v41  ;;  %798 = vmatpush3.bf16.msra.mxu1 %v797_v45  ;;  %v908_v54 = vunpack.i.h.bf16 %v906_v48  ;;  %v907_v55 = vunpack.i.l.bf16 %v906_v48 }
  0xc9   :  { %v784_v53 = vpack.c.bf16 %v442_v52, %v431_v51  ;;  %783 = vmatprep.subr.bf16.mxu0 %v782_v50  ;;  %799 = vmatprep.subr.bf16.mxu1 %v994_v0  ;;  %v51_v32 = vsub.s32 %v40_v15, %v50_v27  ;;  %v62_v33 = vsub.s32 %v41_v17, %v61_v28 }
  0xca   :  { %v454_v61 = vsel %vm172_vm7, %v907_v55, %v908_v54 }
  0xcb   :  { %v448_v56 = vpop.permute.xlu1 %447  ;;  %v911_v57 = vpop.permute.xlu0 %910  ;;  %vm76_vm12 = vcmp.ne.s32.totalorder %v51_v32, 0  ;;  %vm79_vm13 = vcmp.lt.s32.totalorder %v51_v32, 0  ;;  %vm77_vm14 = vcmp.ne.s32.totalorder %v62_v33, 0  ;;  %vm80_vm15 = vcmp.lt.s32.totalorder %v62_v33, 0 }
  0xcc   :  { %v913_v58 = vunpack.i.h.bf16 %v911_v57  ;;  %v912_v59 = vunpack.i.l.bf16 %v911_v57  ;;  %785 = vmatpush1.bf16.msra.mxu0 %v784_v53  ;;  %v453_v3 = vsel %vm172_vm7, %v448_v56, %v907_v55  ;;  %v85_v34 = vadd.s32 18, %v51_v32  ;;  %vm82_vm1 = vmand %vm79_vm13, %vm76_vm12 }
  0xcd   :  { %v86_v30 = vadd.s32 18, %v62_v33  ;;  %vm83_vm2 = vmand %vm80_vm15, %vm77_vm14 }
  0xce   :  { %v800_v60 = vpack.c.bf16 %v913_v58, %v908_v54  ;;  %v465_v62 = vsel %vm184_vm6, %v912_v59, %v913_v58  ;;  %v88_v35 = vsel %vm82_vm1, %v85_v34, %v51_v32 }
  0xcf   :  { %v472_v63 = vpop.permute.xlu1 %471  ;;  %v459_v1 = vpop.permute.xlu0 %458  ;;  %v786_v2 = vpack.c.bf16 %v465_v62, %v454_v61  ;;  %v89_v8 = vsel %vm83_vm2, %v86_v30, %v62_v33  ;;  %vm91_vm4 = vcmp.lt.s32.totalorder %v88_v35, 16 }
  0xd0   :  { %v464_v4 = vsel %vm184_vm6, %v459_v1, %v912_v59  ;;  %801 = vmatpush3.bf16.msra.mxu1 %v800_v60  ;;  %vm92_vm5 = vcmp.lt.s32.totalorder %v89_v8, 16  ;;  %v677_v38 = vsel %vm91_vm4, 1.0, %v1000_v7  ;;  %vm351_vm6 = vcmask 261120  }
  0xd1   :  { %v788_v0 = vpack.c.bf16 %v464_v4, %v453_v3  ;;  %787 = vmatprep.subr.bf16.mxu0 %v786_v2  ;;  %741 = vmatprep.subr.mxu1 %v1000_v7  ;;  %v678_v39 = vsel %vm92_vm5, 1.0, %v1000_v7 }
  0xd3   :  { %v470_v6 = vpop.permute.xlu1 %469  ;;  %v474_v10 = vpop.permute.xlu0 %473  ;;  %789 = vmatpush1.bf16.msra.mxu0 %v788_v0 }
  0xd4   :  { %v476_v11 = vsel %vm196_vm8, %v472_v63, %v474_v10  ;;  %742 = vmatpush3.msra.mxu1 %v474_v10  ;;  %v475_v12 = vsel %vm196_vm8, %v470_v6, %v472_v63 }
  0xd5   :  { %496 = vmatprep.subr.mxu0 %v476_v11  ;;  %744 = vmatmul.mubr.msk.f32.vlgmr.msra.gmra.mrb[2].mxu1 %vm202_vm9, %v1123_v14 }
  0xd7   :  { %497 = vmatpush1.msra.mxu0 %v475_v12 }
  0xd8   :  { %682 = vmatmul.mubr.msk.f32.vlgmr.msra.gmra.mrb[2].mxu0 %vm202_vm9, %v1123_v14  ;;  %v72_v14 = vmul.u32 18, %v71_v25 }
  0xda   :  { %v73_v29 = vsub.s32 %v42_v16, %v72_v14 }
  0xdc   :  { %vm78_vm10 = vcmp.ne.s32.totalorder %v73_v29, 0  ;;  %vm81_vm11 = vcmp.lt.s32.totalorder %v73_v29, 0  ;;  %v87_v9 = vadd.s32 18, %v73_v29 }
  0xdd   :  { %vm84_vm0 = vmand %vm81_vm11, %vm78_vm10 }
  0xde   :  { %v90_v31 = vsel %vm84_vm0, %v87_v9, %v73_v29 }
  0xdf   :  { %vm93_vm3 = vcmp.lt.s32.totalorder %v90_v31, 16 }
  0xe0   :  { %v679_v5 = vsel %vm93_vm3, 1.0, %v1000_v7 }
 0x18d   :  { %v343_v36 = vpop.f32.mrb[0].mxu1 }
 0x18e   :  { %v724_v37 = vpop.f32.mrb[1].mxu1  ;;  %v349_v40 = vmul.f32 %v679_v5, %v343_v36 }
 0x190   :  { %v359_v44 = vmul.f32 %v349_v40, %v343_v36  ;;  %v352_v47 = vsel %vm351_vm6, %v349_v40, 0.0 }
 0x191   :  { %v272_v41 = vpop.f32.mrb[0].mxu0 }
 0x192   :  { %v347_v42 = vmul.f32 %v677_v38, %v272_v41  ;;  %v274_v43 = vpop.f32.mrb[1].mxu0  ;;  %v361_v50 = vsel %vm351_vm6, %v359_v44, 0.0 }
 0x193   :  { %v348_v45 = vmul.f32 %v678_v39, %v274_v43 }
 0x194   :  { %v357_v46 = vmul.f32 %v347_v42, %v272_v41 }
 0x195   :  { %v358_v48 = vmul.f32 %v348_v45, %v274_v43  ;;  %v350_v49 = vadd.f32 %v348_v45, %v347_v42 }
 0x197   :  { %v353_v51 = vadd.f32 %v352_v47, %v350_v49  ;;  %v360_v52 = vadd.f32 %v358_v48, %v357_v46 }
 0x199   :  { %354 = vadd.xlane.f32.xlu0 %v353_v51  ;;  %v362_v53 = vadd.f32 %v361_v50, %v360_v52 }
 0x19d   :  { %363 = vadd.xlane.f32.xlu0 %v362_v53 }
 0x1a8   :  { %v617_v7 = vpop.f32.mrb[2].mxu1 }
 0x1a9   :  { %v745_v54 = vpop.f32.mrb[3].mxu1  ;;  %v623_v55 = vmul.f32 %v679_v5, %v617_v7 }
 0x1ab   :  { %v546_v56 = vpop.f32.mrb[2].mxu0  ;;  %v632_v61 = vmul.f32 %v623_v55, %v617_v7  ;;  %v625_v62 = vsel %vm351_vm6, %v623_v55, 0.0 }
 0x1ac   :  { %v621_v57 = vmul.f32 %v677_v38, %v546_v56  ;;  %v548_v58 = vpop.f32.mrb[3].mxu0 }
 0x1ad   :  { %v622_v59 = vmul.f32 %v678_v39, %v548_v58  ;;  %v634_v4 = vsel %vm351_vm6, %v632_v61, 0.0 }
 0x1ae   :  { %v630_v60 = vmul.f32 %v621_v57, %v546_v56 }
 0x1af   :  { %v631_v63 = vmul.f32 %v622_v59, %v548_v58  ;;  %v624_v1 = vadd.f32 %v622_v59, %v621_v57 }
 0x1b1   :  { %v626_v2 = vadd.f32 %v625_v62, %v624_v1  ;;  %v633_v3 = vadd.f32 %v631_v63, %v630_v60 }
 0x1b3   :  { %627 = vadd.xlane.f32.xlu1 %v626_v2  ;;  %v635_v0 = vadd.f32 %v634_v4, %v633_v3 }
 0x1b5   :  { %636 = vadd.xlane.f32.xlu0 %v635_v0 }
 0x226   :  { %v355_v6 = vpop.xlane.xlu0 %354 }
 0x227   :  { %v356_v10 = vmul.f32 0.00390625, %v355_v6 }
 0x229   :  { %v366_v11 = vmul.f32 %v356_v10, %v356_v10  ;;  %v368_v17 = vsub.f32 %v272_v41, %v356_v10  ;;  %v369_v18 = vsub.f32 %v274_v43, %v356_v10  ;;  %v370_v19 = vsub.f32 %v343_v36, %v356_v10 }
 0x22a   :  { %v364_v12 = vpop.xlane.xlu0 %363 }
 0x22b   :  { %v365_v13 = vmul.f32 0.00390625, %v364_v12 }
 0x22d   :  { %v367_v15 = vsub.f32 %v365_v13, %v366_v11 }
 0x22f   :  { %v371_v16 = vadd.f32 1e-05, %v367_v15 }
 0x231   :  { %914 = vrsqrt.f32 %v371_v16 }
 0x23b   :  { %v915_v20 = vpop.eup %914 }
 0x23c   :  { %v373_v22 = vmul.f32 %v915_v20, %v368_v17  ;;  %v374_v23 = vmul.f32 %v915_v20, %v369_v18  ;;  %v375_v24 = vmul.f32 %v915_v20, %v370_v19 }
 0x23e   :  { %v376_v25 = vmul.f32 0.3, %v373_v22  ;;  %v377_v26 = vmul.f32 0.3, %v374_v23  ;;  %v378_v21 = vmul.f32 0.3, %v375_v24 }
 0x240   :  { %v628_v14 = vpop.xlane.xlu1 %627  ;;  %v379_v27 = vmax.f32 %v373_v22, %v376_v25  ;;  %v380_v28 = vmax.f32 %v374_v23, %v377_v26  ;;  %v381_v29 = vmax.f32 %v375_v24, %v378_v21 }
 0x241   :  { %v629_v32 = vmul.f32 0.00390625, %v628_v14 }
 0x242   :  { %v637_v33 = vpop.xlane.xlu0 %636  ;;  %382 = vst [vmem:[#allocation7] sm:$0xff] %v379_v27  ;;  %383 = vst [vmem:[#allocation7 + $0x8] sm:$0xff] %v380_v28 }
 0x243   :  { %384 = vst.msk [vmem:[#allocation7 + $0x10] sm:$0xff] %vm351_vm6, %v381_v29  ;;  %v639_v9 = vmul.f32 %v629_v32, %v629_v32  ;;  %v638_v34 = vmul.f32 0.00390625, %v637_v33  ;;  %v641_v35 = vsub.f32 %v546_v56, %v629_v32  ;;  %v642_v8 = vsub.f32 %v548_v58, %v629_v32 }
 0x244   :  { %v643_v5 = vsub.f32 %v617_v7, %v629_v32 }
 0x245   :  { %v640_v30 = vsub.f32 %v638_v34, %v639_v9 }
 0x247   :  { %v644_v31 = vadd.f32 1e-05, %v640_v30 }
 0x249   :  { %916 = vrsqrt.f32 %v644_v31 }
 0x253   :  { %v917_v36 = vpop.eup %916 }
 0x254   :  { %v646_v37 = vmul.f32 %v917_v36, %v641_v35  ;;  %v647_v38 = vmul.f32 %v917_v36, %v642_v8  ;;  %v648_v39 = vmul.f32 %v917_v36, %v643_v5 }
 0x256   :  { %v649_v40 = vmul.f32 0.3, %v646_v37  ;;  %v650_v41 = vmul.f32 0.3, %v647_v38  ;;  %v651_v42 = vmul.f32 0.3, %v648_v39 }
 0x258   :  { %v652_v43 = vmax.f32 %v646_v37, %v649_v40  ;;  %v653_v44 = vmax.f32 %v647_v38, %v650_v41  ;;  %v654_v45 = vmax.f32 %v648_v39, %v651_v42 }
 0x25a   :  { %656 = vst [vmem:[#allocation7 + $0x18] sm:$0xff] %v652_v43  ;;  %657 = vst [vmem:[#allocation7 + $0x20] sm:$0xff] %v653_v44 }
 0x25b   :  { %658 = vst.msk [vmem:[#allocation7 + $0x28] sm:$0xff] %vm351_vm6, %v654_v45 }
 0x25c   :  { %973 = shalt.err (!%p970_p6)
}
 0x25d   :  { %s974_s18 = scalar_lea.hbm %s1203_s2, 768 }
 0x25e   :  { %p975_p7 = scmp.ne.s32.totalorder %s1203_s2, %s974_s18  ;;  %p978_p8 = scmp.lt.u32.totalorder %s974_s18, %s1203_s2 }
 0x260   :  { %p980_p9 = pnand %p978_p8, %p975_p7 }
 0x262   :  { %983 = shalt.err (!%p980_p9)
}
 0x263   :  { %670 = dma.vmem_to_hbm [thread:$0]  %s665_s14, 768, %s1203_s2, [#allocation4], %s991_s19, %s991_s19, %s992_s20  }
 0x264   :  { %988 = dma.done.wait [#allocation4], 768  }
 0x265   :  { %989 = vsyncadd [#allocation4], 4294966528 }
 0x266   :  { %674 = vsyncpa [#allocation3], 1 }
 0x267   :  { %675 = vsyncpa [#allocation6], 1 }
 0x268   :  { %676 = vsyncpa [#allocation4], 1 }

</bundles_post_ra>
